<compile_context>
chip_gen: v7x
topology: tpu7x:2x2x1
jax: 0.10.0
libtpu: 0.0.40
codegen_flags: <defaults>
</compile_context>

<pallas_src>
import functools

import jax
import jax.numpy as jnp
import numpy as np
from jax.experimental import pallas as pl
from jax.experimental.pallas import tpu as pltpu

_N_TABLE = 256   # idx = floor(clip(x,0,1)*255) is always in [0, 255]
_UNROLL = 8


# ---------------------------------------------------------------------------
# Tile-size selection helpers (lane-dense, few grid steps, VMEM-friendly).
# ---------------------------------------------------------------------------
def _pick_row_tile(n_rows):
    for t in (64, 32, 16, 8):
        if n_rows % t == 0:
            return t
    return n_rows                      # full first dim (allowed by BlockSpec rules)


def _pick_lane_tile(d):
    for k in range(16, 0, -1):         # 2048 ... 128, largest multiple of 128 dividing d
        t = 128 * k
        if d % t == 0:
            return t
    return d                           # fall back to full (still correct, not lane-dense)


# ---------------------------------------------------------------------------
# Pallas kernel: FFX.forward encrypt path on one (TR, TL) tile of flattened NCHW.
# ---------------------------------------------------------------------------
def _ffx_encrypt_kernel(x_ref, mask_ref, lut_ref, o_ref, *, inv_scale):
    """
    x_ref    : (TR, TL) f32 VMEM   -- pixels, flattened NCHW layout
    mask_ref : (1,  TL) f32 VMEM   -- 1.0 where the binary FFX key selects the pixel
    lut_ref  : (256,)   f32 SMEM   -- FPE lookup table, already divided by lookup.max()
    o_ref    : (TR, TL) f32 VMEM
    """
    x = jnp.clip(x_ref[...], 0.0, 1.0)          # torch.clamp(X, 0, 1)
    q = jnp.floor(x * 255.0)                    # (X * 255).long(), kept as f32
    passthrough = q * inv_scale                 # non-keyed features: idx / lookup.max()

    # Keyed features: lut_scaled[q].  Compare/select sweep over the 256 table
    # entries (scalar SMEM load + VPU cmp/sel per entry), manually unrolled x8.
    # `acc` init is always overwritten because q hits exactly one entry.
    def body(i, acc):
        base = i * _UNROLL
        for k in range(_UNROLL):
            v = base + k
            acc = jnp.where(q == v.astype(jnp.float32), lut_ref[v], acc)
        return acc

    gathered = jax.lax.fori_loop(0, _N_TABLE // _UNROLL, body, passthrough)

    # X[..., key] = lookup[X[..., key]] : single select on the 0/1 key mask.
    o_ref[...] = jnp.where(mask_ref[...] != 0.0, gathered, passthrough)


# ---------------------------------------------------------------------------
# Wrapper == FFX.forward(X, decrypt=False)
# ---------------------------------------------------------------------------
def ffx_forward(x, key_mask, lookup, block_size):
    b, c, h, w = x.shape
    assert h % block_size == 0 and w % block_size == 0, "image not divisible by block_size"
    d_total = c * h * w

    lookup_np = np.asarray(lookup, dtype=np.float32)
    assert lookup_np.shape[0] >= _N_TABLE, "lookup table must cover indices 0..255"
    scale = float(lookup_np.max())
    lut_scaled = jnp.asarray(lookup_np[:_N_TABLE] / scale, dtype=jnp.float32)

    # Re-layout the per-block feature key into flattened-NCHW pixel order:
    # segmented feature index of pixel (c, h, w) is (h%bs)*bs*C + (w%bs)*C + c.
    key_np = np.asarray(key_mask).astype(np.float32).reshape(-1)
    assert key_np.shape[0] == block_size * block_size * c
    f_idx = (np.arange(h)[:, None] % block_size) * block_size * c \
          + (np.arange(w)[None, :] % block_size) * c                      # (H, W)
    f_idx = f_idx[None, :, :] + np.arange(c)[:, None, None]               # (C, H, W)
    mask = jnp.asarray(key_np[f_idx].reshape(1, d_total))

    xs = x.astype(jnp.float32).reshape(b, d_total)

    tr = _pick_row_tile(b)
    tl = _pick_lane_tile(d_total)

    kernel = functools.partial(_ffx_encrypt_kernel, inv_scale=float(1.0 / scale))
    out_flat = pl.pallas_call(
        kernel,
        out_shape=jax.ShapeDtypeStruct((b, d_total), jnp.float32),
        grid=(b // tr, d_total // tl),
        in_specs=[
            pl.BlockSpec((tr, tl), lambda i, j: (i, j)),             # pixels
            pl.BlockSpec((1, tl), lambda i, j: (0, j)),              # key mask (reused over rows)
            pl.BlockSpec(memory_space=pltpu.MemorySpace.SMEM),       # pre-scaled lookup table
        ],
        out_specs=pl.BlockSpec((tr, tl), lambda i, j: (i, j)),
        compiler_params=pltpu.CompilerParams(
            dimension_semantics=("parallel", "parallel")),
    )(xs, mask, lut_scaled)

    return out_flat.reshape(b, c, h, w)


# ---------------------------------------------------------------------------
# Pure-JAX reference mirroring the PyTorch module (segment/integrate included)
# ---------------------------------------------------------------------------
def _segment(x, block_size):
    b, c, h, w = x.shape
    ba0, ba1 = h // block_size, w // block_size
    x = jnp.transpose(x, (0, 2, 3, 1))
    x = x.reshape(b, ba0, block_size, ba1, block_size, c)
    x = jnp.transpose(x, (0, 1, 3, 2, 4, 5))
    return x.reshape(b, ba0, ba1, block_size * block_size * c)


def _integrate(x, block_size):
    b, ba0, ba1, d = x.shape
    c = d // (block_size * block_size)
    x = x.reshape(b, ba0, ba1, block_size, block_size, c)
    x = jnp.transpose(x, (0, 1, 3, 2, 4, 5))
    x = x.reshape(b, ba0 * block_size, ba1 * block_size, c)
    return jnp.transpose(x, (0, 3, 1, 2))


def ffx_forward_ref(x, key_mask, lookup, block_size):
    xs = _segment(x.astype(jnp.float32), block_size)
    xc = jnp.clip(xs, 0.0, 1.0)
    idx = (xc * 255.0).astype(jnp.int32)
    lut = jnp.asarray(np.asarray(lookup), dtype=jnp.float32)
    gathered = jnp.take(lut, idx)
    mask = jnp.asarray(np.asarray(key_mask), dtype=bool)[None, None, None, :]
    val = jnp.where(mask, gathered, idx.astype(jnp.float32))
    out = val / float(np.asarray(lookup).max())
    return _integrate(out, block_size)


if __name__ == "__main__":
    # Small config consistent with the module: NCHW input, 3 channels.
    B, C, H, W = 2, 3, 16, 16
    block_size = 4
    D = block_size * block_size * C          # 48

    # Deterministic parameter stand-ins for torch.randperm / pyffx:
    key_perm = np.random.RandomState(0).permutation(D)
    key_mask = (key_perm > D / 2).astype(np.int32)
    lookup = np.random.RandomState(1).permutation(1000)[:256].astype(np.float32)

    x = jax.random.uniform(jax.random.PRNGKey(0), (B, C, H, W), dtype=jnp.float32)

    out = ffx_forward(x, key_mask, lookup, block_size)
    out = jax.block_until_ready(out)

    ref = ffx_forward_ref(x, key_mask, lookup, block_size)
    assert out.shape == (B, C, H, W) and out.dtype == jnp.float32
    np.testing.assert_allclose(np.asarray(out), np.asarray(ref), rtol=1e-6, atol=1e-6)

    print("KERNEL_OK")
</pallas_src>

<mosaic_0001>
module attributes {stable_mosaic.version = 11 : i64} {
  func.func @_ffx_encrypt_kernel(%arg0: i32, %arg1: i32, %arg2: memref<2x768xf32, #tpu.memory_space<vmem>>, %arg3: memref<1x768xf32, #tpu.memory_space<vmem>>, %arg4: memref<256xf32, #tpu.memory_space<smem>>, %arg5: memref<2x768xf32, #tpu.memory_space<vmem>>) attributes {dimension_semantics = [#tpu.dimension_semantics<parallel>, #tpu.dimension_semantics<parallel>], iteration_bounds = array<i64: 1, 1>, scalar_prefetch = 0 : i64, scratch_operands = 0 : i64, tpu.core_type = #tpu.core_type<tc>, window_params = [{transform_indices = @transform_0, window_bounds = array<i64: 2, 768>}, {transform_indices = @transform_1, window_bounds = array<i64: 1, 768>}, {transform_indices = @transform_2, window_bounds = array<i64: 256>}, {transform_indices = @transform_3, window_bounds = array<i64: 2, 768>}]} {
    %c0 = arith.constant 0 : index
    %c0_0 = arith.constant 0 : index
    %0 = vector.load %arg2[%c0, %c0_0] : memref<2x768xf32, #tpu.memory_space<vmem>>, vector<2x768xf32>
    %cst = arith.constant 0.000000e+00 : f32
    %cst_1 = arith.constant 1.000000e+00 : f32
    %1 = vector.broadcast %cst : f32 to vector<2x768xf32>
    %2 = arith.maximumf %1, %0 : vector<2x768xf32>
    %3 = vector.broadcast %cst_1 : f32 to vector<2x768xf32>
    %4 = arith.minimumf %3, %2 : vector<2x768xf32>
    %cst_2 = arith.constant 2.550000e+02 : f32
    %5 = vector.broadcast %cst_2 : f32 to vector<2x768xf32>
    %6 = arith.mulf %4, %5 : vector<2x768xf32>
    %7 = math.floor %6 : vector<2x768xf32>
    %cst_3 = arith.constant 0.00100300903 : f32
    %8 = vector.broadcast %cst_3 : f32 to vector<2x768xf32>
    %9 = arith.mulf %7, %8 : vector<2x768xf32>
    %c0_i32 = arith.constant 0 : i32
    %c32_i32 = arith.constant 32 : i32
    %10 = arith.addi %c0_i32, %c32_i32 : i32
    %c1_i32 = arith.constant 1 : i32
    %11 = scf.for %arg6 = %c0_i32 to %10 step %c1_i32 iter_args(%arg7 = %9) -> (vector<2x768xf32>)  : i32 {
      %c8_i32 = arith.constant 8 : i32
      %19 = arith.muli %arg6, %c8_i32 : i32
      %c0_i32_10 = arith.constant 0 : i32
      %20 = arith.addi %19, %c0_i32_10 : i32
      %21 = arith.sitofp %20 : i32 to f32
      %22 = vector.broadcast %21 : f32 to vector<2x768xf32>
      %23 = arith.cmpf oeq, %7, %22 : vector<2x768xf32>
      %24 = arith.index_cast %20 : i32 to index
      %25 = memref.load %arg4[%24] : memref<256xf32, #tpu.memory_space<smem>>
      %26 = vector.broadcast %25 : f32 to vector<2x768xf32>
      %27 = arith.select %23, %26, %arg7 : vector<2x768xi1>, vector<2x768xf32>
      %c1_i32_11 = arith.constant 1 : i32
      %28 = arith.addi %19, %c1_i32_11 : i32
      %29 = arith.sitofp %28 : i32 to f32
      %30 = vector.broadcast %29 : f32 to vector<2x768xf32>
      %31 = arith.cmpf oeq, %7, %30 : vector<2x768xf32>
      %32 = arith.index_cast %28 : i32 to index
      %33 = memref.load %arg4[%32] : memref<256xf32, #tpu.memory_space<smem>>
      %34 = vector.broadcast %33 : f32 to vector<2x768xf32>
      %35 = arith.select %31, %34, %27 : vector<2x768xi1>, vector<2x768xf32>
      %c2_i32 = arith.constant 2 : i32
      %36 = arith.addi %19, %c2_i32 : i32
      %37 = arith.sitofp %36 : i32 to f32
      %38 = vector.broadcast %37 : f32 to vector<2x768xf32>
      %39 = arith.cmpf oeq, %7, %38 : vector<2x768xf32>
      %40 = arith.index_cast %36 : i32 to index
      %41 = memref.load %arg4[%40] : memref<256xf32, #tpu.memory_space<smem>>
      %42 = vector.broadcast %41 : f32 to vector<2x768xf32>
      %43 = arith.select %39, %42, %35 : vector<2x768xi1>, vector<2x768xf32>
      %c3_i32 = arith.constant 3 : i32
      %44 = arith.addi %19, %c3_i32 : i32
      %45 = arith.sitofp %44 : i32 to f32
      %46 = vector.broadcast %45 : f32 to vector<2x768xf32>
      %47 = arith.cmpf oeq, %7, %46 : vector<2x768xf32>
      %48 = arith.index_cast %44 : i32 to index
      %49 = memref.load %arg4[%48] : memref<256xf32, #tpu.memory_space<smem>>
      %50 = vector.broadcast %49 : f32 to vector<2x768xf32>
      %51 = arith.select %47, %50, %43 : vector<2x768xi1>, vector<2x768xf32>
      %c4_i32 = arith.constant 4 : i32
      %52 = arith.addi %19, %c4_i32 : i32
      %53 = arith.sitofp %52 : i32 to f32
      %54 = vector.broadcast %53 : f32 to vector<2x768xf32>
      %55 = arith.cmpf oeq, %7, %54 : vector<2x768xf32>
      %56 = arith.index_cast %52 : i32 to index
      %57 = memref.load %arg4[%56] : memref<256xf32, #tpu.memory_space<smem>>
      %58 = vector.broadcast %57 : f32 to vector<2x768xf32>
      %59 = arith.select %55, %58, %51 : vector<2x768xi1>, vector<2x768xf32>
      %c5_i32 = arith.constant 5 : i32
      %60 = arith.addi %19, %c5_i32 : i32
      %61 = arith.sitofp %60 : i32 to f32
      %62 = vector.broadcast %61 : f32 to vector<2x768xf32>
      %63 = arith.cmpf oeq, %7, %62 : vector<2x768xf32>
      %64 = arith.index_cast %60 : i32 to index
      %65 = memref.load %arg4[%64] : memref<256xf32, #tpu.memory_space<smem>>
      %66 = vector.broadcast %65 : f32 to vector<2x768xf32>
      %67 = arith.select %63, %66, %59 : vector<2x768xi1>, vector<2x768xf32>
      %c6_i32 = arith.constant 6 : i32
      %68 = arith.addi %19, %c6_i32 : i32
      %69 = arith.sitofp %68 : i32 to f32
      %70 = vector.broadcast %69 : f32 to vector<2x768xf32>
      %71 = arith.cmpf oeq, %7, %70 : vector<2x768xf32>
      %72 = arith.index_cast %68 : i32 to index
      %73 = memref.load %arg4[%72] : memref<256xf32, #tpu.memory_space<smem>>
      %74 = vector.broadcast %73 : f32 to vector<2x768xf32>
      %75 = arith.select %71, %74, %67 : vector<2x768xi1>, vector<2x768xf32>
      %c7_i32 = arith.constant 7 : i32
      %76 = arith.addi %19, %c7_i32 : i32
      %77 = arith.sitofp %76 : i32 to f32
      %78 = vector.broadcast %77 : f32 to vector<2x768xf32>
      %79 = arith.cmpf oeq, %7, %78 : vector<2x768xf32>
      %80 = arith.index_cast %76 : i32 to index
      %81 = memref.load %arg4[%80] : memref<256xf32, #tpu.memory_space<smem>>
      %82 = vector.broadcast %81 : f32 to vector<2x768xf32>
      %83 = arith.select %79, %82, %75 : vector<2x768xi1>, vector<2x768xf32>
      scf.yield %83 : vector<2x768xf32>
    }
    %c32_i32_4 = arith.constant 32 : i32
    %c0_5 = arith.constant 0 : index
    %c0_6 = arith.constant 0 : index
    %12 = vector.load %arg3[%c0_5, %c0_6] : memref<1x768xf32, #tpu.memory_space<vmem>>, vector<1x768xf32>
    %cst_7 = arith.constant 0.000000e+00 : f32
    %13 = vector.broadcast %cst_7 : f32 to vector<1x768xf32>
    %14 = arith.cmpf one, %12, %13 : vector<1x768xf32>
    %15 = vector.shape_cast %14 : vector<1x768xi1> to vector<1x768xi1>
    %16 = vector.broadcast %15 : vector<1x768xi1> to vector<2x768xi1>
    %17 = arith.select %16, %11, %9 : vector<2x768xi1>, vector<2x768xf32>
    %c0_8 = arith.constant 0 : index
    %c0_9 = arith.constant 0 : index
    %18 = vector.load %arg5[%c0_8, %c0_9] : memref<2x768xf32, #tpu.memory_space<vmem>>, vector<2x768xf32>
    tpu.vector_store %arg5[%c0_8, %c0_9], %17 {strides = array<i32>} : memref<2x768xf32, #tpu.memory_space<vmem>>, vector<2x768xf32>,
    return
  }
  func.func @transform_0(%arg0: i32, %arg1: i32) -> (i32, i32) {
    %c0_i32 = arith.constant 0 : i32
    return %arg0, %arg1 : i32, i32
  }
  func.func @transform_1(%arg0: i32, %arg1: i32) -> (i32, i32) {
    %c0_i32 = arith.constant 0 : i32
    %c0_i32_0 = arith.constant 0 : i32
    return %c0_i32, %arg1 : i32, i32
  }
  func.func @transform_2(%arg0: i32, %arg1: i32) -> i32 {
    %c0_i32 = arith.constant 0 : i32
    %c0_i32_0 = arith.constant 0 : i32
    return %c0_i32 : i32
  }
  func.func @transform_3(%arg0: i32, %arg1: i32) -> (i32, i32) {
    %c0_i32 = arith.constant 0 : i32
    return %arg0, %arg1 : i32, i32
  }
}

</mosaic_0001>

<bundles_post_ra>
// kernel: tpu_custom_call.1
= control target key start
LH: loop header
LB: loop body
LE: loop exit
PB: predicated region body
PF: predicated region fallthrough
CT: control target
= control target key end

     0   :  { %8 = vsyncpa [#allocation3], 0  ;;  %s632_s0 = inlined_call_operand.hbm [shape: f32[2,768], index: 0, kind: input, shape index: {}]   ;;  %s633_s1 = inlined_call_operand.hbm [shape: f32[1,768], index: 1, kind: input, shape index: {}]   ;;  %s634_s2 = inlined_call_operand.vmem [shape: f32[256], index: 2, kind: input, shape index: {}]   ;;  %s635_s3 = inlined_call_operand.hbm [shape: f32[2,768], index: 3, kind: output, shape index: {}]  }
   0x1   :  { %9 = vsyncpa [#allocation7], 0 }
   0x2   :  { %10 = vsyncpa [#allocation5], 0 }
   0x3   :  { %11 = vsyncpa [#allocation4], 0  ;;  %s454_s12 = smov [#allocation2]   ;;  %s455_s14 = smov [#allocation6]  }
   0x4   :  { %s18_s13 = sshll.u32 %s454_s12, 4  ;;  %s28_s15 = sshll.u32 %s455_s14, 4  ;;  %s19_s13 = int_to_ptr.vmem [resolvable:$true] %s18_s13  ;;  %s29_s15 = int_to_ptr.vmem [resolvable:$true] %s28_s15 }
   0x5   :  { %s344_s18 = scalar_lea.hbm %s632_s0, 192 }
   0x6   :  { %p345_p0 = scmp.ne.s32.totalorder %s632_s0, %s344_s18  ;;  %p348_p1 = scmp.lt.u32.totalorder %s344_s18, %s632_s0 }
   0x8   :  { %p350_p2 = pnand %p348_p1, %p345_p0 }
   0xa   :  { %353 = shalt.err (!%p350_p2)
}
   0xb   :  { %s354_s23 = scalar_lea.vmem %s19_s13, 192  ;;  %p359_p4 = scmp.lt.s32.totalorder %s19_s13, %s19_s13 }
   0xc   :  { %p355_p3 = scmp.ne.s32.totalorder %s19_s13, %s354_s23  ;;  %p360_p5 = scmp.lt.s32.totalorder %s354_s23, %s354_s23 }
   0xe   :  { %p361_p6 = por %p360_p5, %p359_p4 }
  0x10   :  { %p362_p7 = pnand %p361_p6, %p355_p3 }
  0x12   :  { %365 = shalt.err (!%p362_p7)
}
  0x13   :  { %21 = dma.hbm_to_vmem [thread:$0]  %s632_s0, 192, %s19_s13, [#allocation3]  }
  0x14   :  { %s366_s28 = scalar_lea.hbm %s633_s1, 96 }
  0x15   :  { %p367_p8 = scmp.ne.s32.totalorder %s633_s1, %s366_s28  ;;  %p370_p9 = scmp.lt.u32.totalorder %s366_s28, %s633_s1 }
  0x17   :  { %p372_p10 = pnand %p370_p9, %p367_p8 }
  0x19   :  { %375 = shalt.err (!%p372_p10)
}
  0x1a   :  { %s376_s6 = scalar_lea.vmem %s29_s15, 96  ;;  %p381_p12 = scmp.lt.s32.totalorder %s29_s15, %s29_s15 }
  0x1b   :  { %p377_p11 = scmp.ne.s32.totalorder %s29_s15, %s376_s6  ;;  %p382_p13 = scmp.lt.s32.totalorder %s376_s6, %s376_s6 }
  0x1d   :  { %p383_p0 = por %p382_p13, %p381_p12 }
  0x1f   :  { %p384_p1 = pnand %p383_p0, %p377_p11 }
  0x21   :  { %387 = shalt.err (!%p384_p1)
}
  0x22   :  { %31 = dma.hbm_to_vmem [thread:$0]  %s633_s1, 96, %s29_s15, [#allocation7]  }
  0x23   :  { %s38_s10 = sshll.u32 %s634_s2, 4  ;;  %s39_s10 = int_to_ptr.vmem [resolvable:$true] %s38_s10 }
  0x24   :  { %s388_s11 = scalar_lea.vmem %s39_s10, 32  ;;  %p393_p3 = scmp.lt.s32.totalorder %s39_s10, %s39_s10 }
  0x25   :  { %p389_p2 = scmp.ne.s32.totalorder %s39_s10, %s388_s11  ;;  %p394_p4 = scmp.lt.s32.totalorder %s388_s11, %s388_s11 }
  0x27   :  { %p395_p5 = por %p394_p4, %p393_p3 }
  0x29   :  { %p396_p6 = pnand %p395_p5, %p389_p2 }
  0x2b   :  { %399 = shalt.err (!%p396_p6)
}
  0x2c   :  { %s456_s12 = smov [#allocation8]  }
  0x2d   :  { %41 = dma.vmem_to_smem %s39_s10, 32, %s456_s12, [#allocation5]  }
  0x2e   :  { %434 = dma.done.wait [#allocation3], 192  }
  0x2f   :  { %435 = vsyncadd [#allocation3], 4294967104 }
  0x30   :  { %436 = dma.done.wait [#allocation7], 96  }
  0x31   :  { %437 = vsyncadd [#allocation7], 4294967200 }
  0x32   :  { %438 = dma.done.wait [#allocation5], 32  }
  0x33   :  { %439 = vsyncadd [#allocation5], 4294967264 }
  0x34   :  { %51 = sfence }
  0x35   :  { %v52_v0 = vld [vmem:[#allocation2] sm:$0xff]  ;;  %v53_v1 = vld [vmem:[#allocation2 + $0x8] sm:$0xf]  ;;  %s523_s1 = smov 0  }
  0x36   :  { %v54_v2 = vmax.f32 %v52_v0, 0.0  ;;  %v55_v3 = vmax.f32 %v53_v1, 0.0 }
  0x38   :  { %v56_v4 = vmin.f32 %v54_v2, 1.0  ;;  %v57_v5 = vmin.f32 %v55_v3, 1.0 }
  0x3a   :  { %v58_v6 = vmul.f32 255.0, %v56_v4  ;;  %v59_v7 = vmul.f32 255.0, %v57_v5 }
  0x3c   :  { %v507_v8 = vfloor.f32 %v58_v6  ;;  %v509_v9 = vfloor.f32 %v59_v7 }
  0x3e   :  { %v512_v10 = vmul.f32 0.001003009, %v507_v8   ;;  %v515_v11 = vmul.f32 0.001003009, %v509_v9  }
  0x40   :  { %v636_v12 = vmov %v515_v11  ;;  %v637_v13 = vmov %v512_v10 }
  0x41 LB: > { %s531_s2 = sshll.u32 %s452_s1, 3  ;;  %s69_s1 = sadd.s32 1, %s452_s1   ;;  %s452_s1 = sphi %s523_s1, %s69_s1   ;;  %v448_v13 = vphi %v637_v13, %v653_v13   ;;  %v444_v12 = vphi %v636_v12, %v652_v12  }
  0x42   : > { %s73_s13 = scvt.s32.f32 %s531_s2  ;;  %s77_s14 = sld [smem:[#allocation8 + %s531_s2]] }
  0x43   : > { %s81_s15 = sadd.s32 1, %s531_s2  ;;  %s90_s16 = sadd.s32 2, %s531_s2 }
  0x44   : > { %v74_v14 = vstv %s73_s13  ;;  %s82_s17 = scvt.s32.f32 %s81_s15  ;;  %s86_s18 = sld [smem:[#allocation8 + %s81_s15]] }
  0x45   : > { %s91_s19 = scvt.s32.f32 %s90_s16  ;;  %s537_s20 = sld [smem:[#allocation8 + %s90_s16]]  ;;  %vm75_vm0 = vcmp.eq.f32.partialorder %v507_v8, %v74_v14  ;;  %vm76_vm1 = vcmp.eq.f32.partialorder %v509_v9, %v74_v14 }
  0x46   : > { %v83_v15 = vstv %s82_s17  ;;  %s99_s21 = sadd.s32 3, %s531_s2  ;;  %s108_s22 = sadd.s32 4, %s531_s2 }
  0x47   : > { %v92_v16 = vstv %s91_s19  ;;  %s100_s23 = scvt.s32.f32 %s99_s21  ;;  %s543_s24 = sld [smem:[#allocation8 + %s99_s21]]  ;;  %vm546_vm2 = vcmp.eq.f32.partialorder %v507_v8, %v83_v15  ;;  %vm551_vm3 = vcmp.eq.f32.partialorder %v509_v9, %v83_v15 }
  0x48   : > { %v78_v17 = vstv %s77_s14  ;;  %vm556_vm4 = vcmp.eq.f32.partialorder %v507_v8, %v92_v16  ;;  %s109_s25 = scvt.s32.f32 %s108_s22  ;;  %s560_s26 = sld [smem:[#allocation8 + %s108_s22]]  ;;  %vm563_vm5 = vcmp.eq.f32.partialorder %v509_v9, %v92_v16 }
  0x49   : > { %v79_v21 = vsel %vm75_vm0, %v78_v17, %v448_v13  ;;  %v80_v22 = vsel %vm76_vm1, %v78_v17, %v444_v12  ;;  %v101_v24 = vstv %s100_s23  ;;  %s117_s27 = sadd.s32 5, %s531_s2  ;;  %s126_s28 = sadd.s32 6, %s531_s2 }
  0x4a   : > { %v87_v25 = vstv %s86_s18  ;;  %vm570_vm6 = vcmp.eq.f32.partialorder %v507_v8, %v101_v24  ;;  %vm575_vm7 = vcmp.eq.f32.partialorder %v509_v9, %v101_v24  ;;  %v110_v28 = vstv %s109_s25  ;;  %s118_s29 = scvt.s32.f32 %s117_s27  ;;  %s122_s30 = sld [smem:[#allocation8 + %s117_s27]] }
  0x4b   : > { %v88_v29 = vsel %vm546_vm2, %v87_v25, %v79_v21  ;;  %v89_v30 = vsel %vm551_vm3, %v87_v25, %v80_v22  ;;  %v96_v31 = vstv %s537_s20  ;;  %vm585_vm8 = vcmp.eq.f32.partialorder %v507_v8, %v110_v28  ;;  %s127_s4 = scvt.s32.f32 %s126_s28  ;;  %s131_s5 = sld [smem:[#allocation8 + %s126_s28]] }
  0x4c   : > { %v97_v33 = vsel %vm556_vm4, %v96_v31, %v88_v29  ;;  %v98_v34 = vsel %vm563_vm5, %v96_v31, %v89_v30  ;;  %vm112_vm9 = vcmp.eq.f32.partialorder %v509_v9, %v110_v28  ;;  %v119_v35 = vstv %s118_s29  ;;  %s135_s6 = sadd.s32 7, %s531_s2  ;;  %p66_p7 = scmp.ge.s32.totalorder %s69_s1, 32  }
  0x4d   : > { %v105_v36 = vstv %s543_s24  ;;  %vm120_vm10 = vcmp.eq.f32.partialorder %v507_v8, %v119_v35  ;;  %vm121_vm11 = vcmp.eq.f32.partialorder %v509_v9, %v119_v35  ;;  %v128_v37 = vstv %s127_s4  ;;  %s136_s0 = scvt.s32.f32 %s135_s6  ;;  %s140_s7 = sld [smem:[#allocation8 + %s135_s6]]  ;;  %v144_v53 = vld [vmem:[#allocation6] sm:$0x3f] (%p66_p7) }
  0x4e   : > { %v106_v38 = vsel %vm570_vm6, %v105_v36, %v97_v33  ;;  %v107_v39 = vsel %vm575_vm7, %v105_v36, %v98_v34  ;;  %v114_v40 = vstv %s560_s26  ;;  %vm129_vm12 = vcmp.eq.f32.partialorder %v507_v8, %v128_v37  ;;  %s459_s8 = smov (%p66_p7), [#allocation9]  }
  0x4f   : > { %v115_v41 = vsel %vm585_vm8, %v114_v40, %v106_v38  ;;  %v116_v42 = vsel %vm112_vm9, %v114_v40, %v107_v39  ;;  %vm130_vm13 = vcmp.eq.f32.partialorder %v509_v9, %v128_v37  ;;  %v137_v43 = vstv %s136_s0  ;;  %68 = sbr.rel (!%p66_p7) target bundleno = 65 (0x41), region = 51  ;;  %s290_s9 = sshll.u32 (%p66_p7), %s459_s8, 4  ;;  %s291_s9 = int_to_ptr.vmem [resolvable:$true] %s290_s9 }
  0x50   : > { %v123_v44 = vstv %s122_s30  ;;  %vm138_vm14 = vcmp.eq.f32.partialorder %v507_v8, %v137_v43  ;;  %vm139_vm15 = vcmp.eq.f32.partialorder %v509_v9, %v137_v43  ;;  %v147_v54 = vlaneseq (%p66_p7)  ;;  %s400_s10 = scalar_lea.vmem (%p66_p7), %s291_s9, 192  ;;  %p405_p9 = scmp.lt.s32.totalorder (%p66_p7), %s291_s9, %s291_s9 }
  0x51   : > { %v124_v45 = vsel %vm120_vm10, %v123_v44, %v115_v41  ;;  %v125_v46 = vsel %vm121_vm11, %v123_v44, %v116_v42  ;;  %v132_v47 = vstv %s131_s5  ;;  %vm145_vm0 = vcmp.ne.f32.partialorder (%p66_p7), %v144_v53, 0.0  ;;  %p401_p8 = scmp.ne.s32.totalorder (%p66_p7), %s291_s9, %s400_s10  ;;  %p406_p10 = scmp.lt.s32.totalorder (%p66_p7), %s400_s10, %s400_s10 }
  0x52   : > { %v133_v48 = vsel %vm129_vm12, %v132_v47, %v124_v45  ;;  %v134_v49 = vsel %vm130_vm13, %v132_v47, %v125_v46  ;;  %v457_v55 = vmov (%p66_p7), 1983009808   ;;  %v148_v57 = vshrl.u32 (%p66_p7), %v147_v54, 7 }
  0x53   : > { %v141_v50 = vstv %s140_s7  ;;  %v181_v56 = vunpack.c.l.s4 (%p66_p7), %v457_v55  ;;  %v458_v58 = vmov (%p66_p7), 0   ;;  %v212_v62 = vcombine.high (%p66_p7), %v512_v10, %v512_v10  ;;  %p407_p11 = por (%p66_p7), %p406_p10, %p405_p9 }
  0x54   : > { %v142_v51 = vsel %vm138_vm14, %v141_v50, %v133_v48   ;;  %v143_v52 = vsel %vm139_vm15, %v141_v50, %v134_v49   ;;  %v146_v59 = vsel (%p66_p7), %vm145_vm0, 1, %v458_v58  ;;  %v149_v63 = vsub.s32 (%p66_p7), 0, %v148_v57 }
  0x55   : > { %v652_v12 = vmov %v143_v52  ;;  %v653_v13 = vmov %v142_v51  ;;  %v179_v60 = vcombine.high (%p66_p7), %v142_v51, %v142_v51  ;;  %v182_v61 = vunpack.c.0.s8 (%p66_p7), %v181_v56  ;;  %p408_p12 = pnand (%p66_p7), %p407_p11, %p401_p8 }
  0x56   :  { %v153_v0 = vsub.s32 1, %v148_v57  ;;  %v157_v1 = vsub.s32 2, %v148_v57  ;;  %v161_v2 = vsub.s32 3, %v148_v57  ;;  %v165_v4 = vsub.s32 4, %v148_v57 }
  0x57   :  { %v185_v3 = vsub.s32 %v182_v61, %v148_v57  ;;  %v169_v5 = vsub.s32 5, %v148_v57  ;;  %v150_v6 = vrot.slane %v146_v59, %v149_v63 }
  0x58   :  { %v154_v7 = vrot.slane %v146_v59, %v153_v0  ;;  %v158_v8 = vrot.slane %v146_v59, %v157_v1  ;;  %v162_v9 = vrot.slane %v146_v59, %v161_v2  ;;  %v166_v22 = vrot.slane %v146_v59, %v165_v4 }
  0x59   :  { %v186_v12 = vrot.slane %v142_v51, %v185_v3  ;;  %v193_v13 = vrot.slane %v179_v60, %v185_v3  ;;  %v219_v14 = vrot.slane %v512_v10, %v185_v3  ;;  %v226_v15 = vrot.slane %v212_v62, %v185_v3 }
  0x5a   :  { %vm171_vm1 = vcmp.eq.s32.totalorder %v150_v6, 1  ;;  %vm172_vm2 = vcmp.eq.s32.totalorder %v154_v7, 1  ;;  %vm173_vm3 = vcmp.eq.s32.totalorder %v158_v8, 1  ;;  %vm174_vm4 = vcmp.eq.s32.totalorder %v162_v9, 1 }
  0x5b   :  { %v194_v16 = vcombine.high %v186_v12, %v186_v12  ;;  %v195_v17 = vcombine.high %v193_v13, %v193_v13  ;;  %v227_v18 = vcombine.high %v219_v14, %v219_v14  ;;  %v228_v19 = vcombine.high %v226_v15, %v226_v15 }
  0x5c   :  { %v243_v20 = vsel %vm171_vm1, %v186_v12, %v219_v14  ;;  %v245_v21 = vsel %vm173_vm3, %v193_v13, %v226_v15  ;;  %v170_v23 = vrot.slane %v146_v59, %v169_v5  ;;  %v202_v26 = vrot.slane %v143_v52, %v185_v3 }
  0x5d   :  { %v244_v24 = vsel %vm172_vm2, %v194_v16, %v227_v18  ;;  %v246_v25 = vsel %vm174_vm4, %v195_v17, %v228_v19  ;;  %v235_v27 = vrot.slane %v515_v11, %v185_v3  ;;  %vm175_vm5 = vcmp.eq.s32.totalorder %v166_v22, 1 }
  0x5e   :  { %v255_v28 = vcombine.low %v243_v20, %v244_v24  ;;  %v256_v10 = vcombine.low %v245_v21, %v246_v25  ;;  %vm176_vm6 = vcmp.eq.s32.totalorder %v170_v23, 1  ;;  %v203_v29 = vcombine.high %v202_v26, %v202_v26 }
  0x5f   :  { %v236_v30 = vcombine.high %v235_v27, %v235_v27  ;;  %v247_v31 = vsel %vm175_vm5, %v202_v26, %v235_v27 }
  0x60   :  { %v263_v32 = vrot.slane %v255_v28, %v185_v3  ;;  %v270_v33 = vrot.slane %v256_v10, %v185_v3 }
  0x61   :  { %v248_v34 = vsel %vm176_vm6, %v203_v29, %v236_v30 }
  0x62   :  { %v271_v35 = vcombine.low %v263_v32, %v270_v33  ;;  %v272_v36 = vcombine.low %v247_v31, %v248_v34 }
  0x64   :  { %282 = vst [vmem:[#allocation9] sm:$0xff] %v271_v35  ;;  %313 = vst.sshfl [vmem:[#allocation9 + $0x8] sm:$0x33 pattern:$0x76325410] %v272_v36 }
  0x65   :  { %411 = shalt.err (!%p408_p12)
}
  0x66   :  { %s412_s1 = scalar_lea.hbm %s635_s3, 192 }
  0x67   :  { %p413_p13 = scmp.ne.s32.totalorder %s635_s3, %s412_s1  ;;  %p416_p0 = scmp.lt.u32.totalorder %s412_s1, %s635_s3 }
  0x69   :  { %p418_p1 = pnand %p416_p0, %p413_p13 }
  0x6b   :  { %421 = shalt.err (!%p418_p1)
}
  0x6c   :  { %293 = dma.vmem_to_hbm [thread:$0]  %s291_s9, 192, %s635_s3, [#allocation4]  }
  0x6d   :  { %440 = dma.done.wait [#allocation4], 192  }
  0x6e   :  { %441 = vsyncadd [#allocation4], 4294967104 }
  0x6f   :  { %297 = vsyncpa [#allocation3], 1 }
  0x70   :  { %298 = vsyncpa [#allocation7], 1 }
  0x71   :  { %299 = vsyncpa [#allocation4], 1 }
  0x72   :  { %300 = vsyncpa [#allocation5], 1 }

</bundles_post_ra>
